<compile_context>
chip_gen: v6e
topology: v6e:2x2x1
jax: 0.10.0
libtpu: 0.0.40
codegen_flags: <defaults>
</compile_context>

<pallas_src>
import numpy as np
import jax
import jax.numpy as jnp
from jax.experimental import pallas as pl
from jax.experimental.pallas import tpu as pltpu

BN_EPS = 1e-5


# ---------------------------------------------------------------------------
# Fused DoubleConv kernel
# ---------------------------------------------------------------------------
def _double_conv_kernel(xp_ref, wb1_ref, wb2_ref, g1_ref, b1_ref, g2_ref,
                        b2_ref, o_ref, y1p_ref):
    # xp_ref : (N, H+2, W*Cin) bf16  NHWC input, H zero-padded, (W,Cin) in lanes
    # wb1_ref: (3, W*Cin, W*C) bf16  conv1 band weights (horizontal pad folded in)
    # wb2_ref: (3, W*C,  W*C)  bf16  conv2 band weights
    # g*/b*  : (1, C)          f32   BatchNorm affine params
    # o_ref  : (N*H, W*C)      f32   lane-dense output
    # y1p_ref: (N, H+2, W*C)   bf16  VMEM scratch for the vertically padded
    #                                intermediate (never touches HBM)
    N, Hp, WCin = xp_ref.shape
    H = Hp - 2
    NH, WC = o_ref.shape
    C = g1_ref.shape[1]
    W = WC // C
    inv_m = 1.0 / float(NH * W)          # 1 / (N*H*W)
    f32 = jnp.float32

    def fold_lanes(t):
        # (R, W*C) -> (R, C): exact f32 tree-sum of the W lane groups (VPU/XLU).
        span = t.shape[1]
        while span > C and span % (2 * C) == 0:
            span //= 2
            t = t[:, :span] + t[:, span:2 * span]
        if span > C:                      # non power-of-two W remainder
            acc = t[:, 0:C]
            for w in range(1, span // C):
                acc = acc + t[:, w * C:(w + 1) * C]
            t = acc
        return t

    def spread_lanes(t):
        # (R, C) -> (R, W*C): lane-tile by repeated doubling (exact copies).
        while t.shape[1] < WC:
            t = jnp.concatenate([t, t], axis=1)
        return t[:, :WC]

    def bn_relu(y, g_ref, b_ref):
        # Training-mode BatchNorm2d + ReLU: batch stats over (N, H, W), biased
        # variance, eps=1e-5.  Reductions are exact f32 on the VPU/XLU -- no
        # M=1 MXU matmuls on the serial path, no bf16 demotion of statistics.
        s1 = jnp.sum(y, axis=0, keepdims=True)                 # (1, WC)
        s2 = jnp.sum(y * y, axis=0, keepdims=True)             # (1, WC)
        ch = fold_lanes(jnp.concatenate([s1, s2], axis=0))     # (2, C)
        mean = ch[0:1] * inv_m
        # TODO(synk): E[x^2]-E[x]^2 has cancellation risk for very large |mean|;
        # fine here (conv of normalized activations, exact f32 sums).
        var = ch[1:2] * inv_m - mean * mean
        scale = g_ref[...] * jax.lax.rsqrt(var + BN_EPS)       # (1, C)
        shift = b_ref[...] - mean * scale                      # (1, C)
        ssw = spread_lanes(jnp.concatenate([scale, shift], axis=0))  # (2, WC)
        return jnp.maximum(y * ssw[0:1] + ssw[1:2], 0.0)

    # ---- conv1: 3 band GEMMs (one per vertical tap), K = W*Cin ----
    # Row windows are sliced straight from the Ref (offsets folded into loads);
    # the accumulator is initialised by the first dot (no zeros + add).
    acc = jnp.dot(xp_ref[:, 0:H, :].reshape(NH, WCin), wb1_ref[0],
                  preferred_element_type=f32)
    acc = acc + jnp.dot(xp_ref[:, 1:H + 1, :].reshape(NH, WCin), wb1_ref[1],
                        preferred_element_type=f32)
    acc = acc + jnp.dot(xp_ref[:, 2:H + 2, :].reshape(NH, WCin), wb1_ref[2],
                        preferred_element_type=f32)
    y1 = bn_relu(acc, g1_ref, b1_ref)                          # (NH, WC) f32

    # ---- intermediate: vertical zero-padding via the bf16 VMEM scratch ----
    zrow = jnp.zeros((N, 1, WC), jnp.bfloat16)
    y1p_ref[:, 0:1, :] = zrow
    y1p_ref[:, H + 1:H + 2, :] = zrow
    y1p_ref[:, 1:H + 1, :] = y1.astype(jnp.bfloat16).reshape(N, H, WC)

    # ---- conv2: 3 band GEMMs, K = W*C (=128 here -> single MXU K-pass) ----
    acc2 = jnp.dot(y1p_ref[:, 0:H, :].reshape(NH, WC), wb2_ref[0],
                   preferred_element_type=f32)
    acc2 = acc2 + jnp.dot(y1p_ref[:, 1:H + 1, :].reshape(NH, WC), wb2_ref[1],
                          preferred_element_type=f32)
    acc2 = acc2 + jnp.dot(y1p_ref[:, 2:H + 2, :].reshape(NH, WC), wb2_ref[2],
                          preferred_element_type=f32)
    o_ref[...] = bn_relu(acc2, g2_ref, b2_ref)


# ---------------------------------------------------------------------------
# One-time parameter preparation (hoisted out of the per-call forward)
# ---------------------------------------------------------------------------
def _make_band_weights(w, W):
    """w[kh, kw, ci, co] -> (3, W*Cin, W*Cout) block-Toeplitz band matrices with
    the horizontal SAME-padding folded in (border taps simply dropped):
    B[kh][(j+kw-1)*Cin + ci, j*Cout + co] = w[kh, kw, ci, co]  for 0<=j+kw-1<W."""
    w = np.asarray(w, np.float32)
    KH, KW, Cin, Cout = w.shape
    blocks = np.zeros((KH, W, Cin, W, Cout), np.float32)
    for kw in range(KW):
        for j in range(W):
            src = j + kw - 1               # input column feeding output column j
            if 0 <= src < W:
                blocks[:, src, :, j, :] = w[:, kw]
    return blocks.reshape(KH, W * Cin, W * Cout)


def prepare_double_conv_params(params, W):
    """Build the band-Toeplitz weights once (host-side), NOT per forward call.
    Call this at parameter-init / update time, outside jit."""
    C = int(params["w1"].shape[-1])
    return {
        "wb1": jnp.asarray(_make_band_weights(params["w1"], W), jnp.bfloat16),
        "wb2": jnp.asarray(_make_band_weights(params["w2"], W), jnp.bfloat16),
        "g1": jnp.asarray(params["g1"], jnp.float32).reshape(1, C),
        "b1": jnp.asarray(params["b1"], jnp.float32).reshape(1, C),
        "g2": jnp.asarray(params["g2"], jnp.float32).reshape(1, C),
        "b2": jnp.asarray(params["b2"], jnp.float32).reshape(1, C),
    }


# ---------------------------------------------------------------------------
# Forward wrapper
# ---------------------------------------------------------------------------
def double_conv_forward(x_nchw, prep):
    """DoubleConv2D forward: (N, Cin, H, W) f32 -> (N, Cout, H, W) f32."""
    N, Cin, H, W = x_nchw.shape
    C = prep["g1"].shape[-1]
    NH, WC = N * H, W * C
    Hp = H + 2

    # Tiny layout glue: NCHW -> NHWC, fold (W, Cin) into the lane axis, pad only
    # the H (sublane) axis -- the horizontal padding lives in the weights now.
    xh = jnp.transpose(x_nchw, (0, 2, 3, 1))
    xp = jnp.pad(xh, ((0, 0), (1, 1), (0, 0), (0, 0)))
    xp = xp.reshape(N, Hp, W * Cin).astype(jnp.bfloat16)

    flops = (2 * 3 * NH * (W * Cin) * WC      # conv1 band GEMMs
             + 2 * 3 * NH * WC * WC           # conv2 band GEMMs
             + 24 * NH * WC)                  # BN/ReLU epilogues
    bytes_accessed = int(xp.size * 2 + prep["wb1"].size * 2
                         + prep["wb2"].size * 2 + 4 * C * 4 + NH * WC * 4)

    out2d = pl.pallas_call(
        _double_conv_kernel,
        out_shape=jax.ShapeDtypeStruct((NH, WC), jnp.float32),
        in_specs=[pl.BlockSpec(memory_space=pltpu.MemorySpace.VMEM)] * 7,
        out_specs=pl.BlockSpec(memory_space=pltpu.MemorySpace.VMEM),
        scratch_shapes=[pltpu.VMEM((N, Hp, WC), jnp.bfloat16)],
        compiler_params=pltpu.CompilerParams(vmem_limit_bytes=32 * 1024 * 1024),
        cost_estimate=pl.CostEstimate(flops=flops, transcendentals=2 * C,
                                      bytes_accessed=bytes_accessed),
    )(xp, prep["wb1"], prep["wb2"], prep["g1"], prep["b1"], prep["g2"],
      prep["b2"])

    # (N*H, W*C) -> (N, H, W, C) -> NCHW
    return jnp.transpose(out2d.reshape(N, H, W, C), (0, 3, 1, 2))


# ---------------------------------------------------------------------------
# Plain-JAX f32 reference (training-mode BN) for a correctness check
# ---------------------------------------------------------------------------
def _double_conv_ref(x_nchw, params):
    def conv_bn_relu(x, w, g, b):
        wt = jnp.transpose(w, (3, 2, 0, 1))                  # (Cout, Cin, kh, kw)
        y = jax.lax.conv_general_dilated(
            x, wt, window_strides=(1, 1), padding=((1, 1), (1, 1)),
            dimension_numbers=("NCHW", "OIHW", "NCHW"),
            precision=jax.lax.Precision.HIGHEST)
        mean = jnp.mean(y, axis=(0, 2, 3), keepdims=True)
        var = jnp.mean((y - mean) ** 2, axis=(0, 2, 3), keepdims=True)
        yn = (y - mean) * jax.lax.rsqrt(var + BN_EPS)
        yn = yn * g.reshape(1, -1, 1, 1) + b.reshape(1, -1, 1, 1)
        return jnp.maximum(yn, 0.0)

    y = conv_bn_relu(x_nchw, params["w1"], params["g1"], params["b1"])
    return conv_bn_relu(y, params["w2"], params["g2"], params["b2"])


if __name__ == "__main__":
    key = jax.random.PRNGKey(0)
    kx, k1, k2, kg1, kb1, kg2, kb2 = jax.random.split(key, 7)

    # W * Cout == 128 -> lane-dense output stores and conv2 K == 128.
    N, Cin, Cout, H, W = 2, 4, 8, 16, 16
    x = jax.random.normal(kx, (N, Cin, H, W), jnp.float32)
    params = {
        # Conv weights stored as (kh, kw, ci, co) == torch weight[co, ci, kh, kw].
        "w1": jax.random.normal(k1, (3, 3, Cin, Cout), jnp.float32)
              / jnp.sqrt(9.0 * Cin),
        "g1": 1.0 + 0.1 * jax.random.normal(kg1, (Cout,), jnp.float32),
        "b1": 0.1 * jax.random.normal(kb1, (Cout,), jnp.float32),
        "w2": jax.random.normal(k2, (3, 3, Cout, Cout), jnp.float32)
              / jnp.sqrt(9.0 * Cout),
        "g2": 1.0 + 0.1 * jax.random.normal(kg2, (Cout,), jnp.float32),
        "b2": 0.1 * jax.random.normal(kb2, (Cout,), jnp.float32),
    }

    prep = prepare_double_conv_params(params, W)   # one-time, NOT per call
    fwd = jax.jit(double_conv_forward)

    out = jax.block_until_ready(fwd(x, prep))
    assert out.shape == (N, Cout, H, W), out.shape
    assert bool(jnp.all(jnp.isfinite(out)))

    # Tolerance accounts for intentional bf16 MXU inputs (f32 accumulation).
    ref = jax.jit(_double_conv_ref)(x, params)
    max_err = float(jnp.max(jnp.abs(out - ref)))
    assert max_err < 0.15, f"max abs error vs f32 reference: {max_err}"

    print("KERNEL_OK")
</pallas_src>

<mosaic_0001>
module attributes {stable_mosaic.version = 11 : i64} {
  func.func @_double_conv_kernel(%arg0: memref<2x18x64xbf16, #tpu.memory_space<vmem>>, %arg1: memref<3x64x128xbf16, #tpu.memory_space<vmem>>, %arg2: memref<3x128x128xbf16, #tpu.memory_space<vmem>>, %arg3: memref<1x8xf32, #tpu.memory_space<vmem>>, %arg4: memref<1x8xf32, #tpu.memory_space<vmem>>, %arg5: memref<1x8xf32, #tpu.memory_space<vmem>>, %arg6: memref<1x8xf32, #tpu.memory_space<vmem>>, %arg7: memref<32x128xf32, #tpu.memory_space<vmem>>, %arg8: memref<2x18x128xbf16, #tpu.memory_space<vmem>>) attributes {dimension_semantics = [], scalar_prefetch = 0 : i64, scratch_operands = 1 : i64, tpu.core_type = #tpu.core_type<tc>} {
    %c0 = arith.constant 0 : index
    %c0_0 = arith.constant 0 : index
    %c0_1 = arith.constant 0 : index
    %0 = vector.load %arg0[%c0, %c0_0, %c0_1] : memref<2x18x64xbf16, #tpu.memory_space<vmem>>, vector<2x16x64xbf16>
    %1 = vector.shape_cast %0 : vector<2x16x64xbf16> to vector<32x64xbf16>
    %c0_2 = arith.constant 0 : index
    %c0_3 = arith.constant 0 : index
    %c0_4 = arith.constant 0 : index
    %2 = vector.load %arg1[%c0_2, %c0_3, %c0_4] : memref<3x64x128xbf16, #tpu.memory_space<vmem>>, vector<1x64x128xbf16>
    %3 = vector.shape_cast %2 : vector<1x64x128xbf16> to vector<64x128xbf16>
    %cst = arith.constant dense<0.000000e+00> : vector<32x128xf32>
    %4 = tpu.matmul %1, %3, %cst {dimension_numbers = #tpu.dot_dimension_numbers<[1], [0], [0], [1], [0, 0, 1, 1], [], []>} : vector<32x64xbf16>, vector<64x128xbf16>, vector<32x128xf32> -> vector<32x128xf32>
    %c0_5 = arith.constant 0 : index
    %c1 = arith.constant 1 : index
    %c0_6 = arith.constant 0 : index
    %5 = vector.load %arg0[%c0_5, %c1, %c0_6] : memref<2x18x64xbf16, #tpu.memory_space<vmem>>, vector<2x16x64xbf16>
    %6 = vector.shape_cast %5 : vector<2x16x64xbf16> to vector<32x64xbf16>
    %c1_7 = arith.constant 1 : index
    %c0_8 = arith.constant 0 : index
    %c0_9 = arith.constant 0 : index
    %7 = vector.load %arg1[%c1_7, %c0_8, %c0_9] : memref<3x64x128xbf16, #tpu.memory_space<vmem>>, vector<1x64x128xbf16>
    %8 = vector.shape_cast %7 : vector<1x64x128xbf16> to vector<64x128xbf16>
    %cst_10 = arith.constant dense<0.000000e+00> : vector<32x128xf32>
    %9 = tpu.matmul %6, %8, %cst_10 {dimension_numbers = #tpu.dot_dimension_numbers<[1], [0], [0], [1], [0, 0, 1, 1], [], []>} : vector<32x64xbf16>, vector<64x128xbf16>, vector<32x128xf32> -> vector<32x128xf32>
    %10 = arith.addf %4, %9 : vector<32x128xf32>
    %c0_11 = arith.constant 0 : index
    %c2 = arith.constant 2 : index
    %c0_12 = arith.constant 0 : index
    %11 = vector.load %arg0[%c0_11, %c2, %c0_12] : memref<2x18x64xbf16, #tpu.memory_space<vmem>>, vector<2x16x64xbf16>
    %12 = vector.shape_cast %11 : vector<2x16x64xbf16> to vector<32x64xbf16>
    %c2_13 = arith.constant 2 : index
    %c0_14 = arith.constant 0 : index
    %c0_15 = arith.constant 0 : index
    %13 = vector.load %arg1[%c2_13, %c0_14, %c0_15] : memref<3x64x128xbf16, #tpu.memory_space<vmem>>, vector<1x64x128xbf16>
    %14 = vector.shape_cast %13 : vector<1x64x128xbf16> to vector<64x128xbf16>
    %cst_16 = arith.constant dense<0.000000e+00> : vector<32x128xf32>
    %15 = tpu.matmul %12, %14, %cst_16 {dimension_numbers = #tpu.dot_dimension_numbers<[1], [0], [0], [1], [0, 0, 1, 1], [], []>} : vector<32x64xbf16>, vector<64x128xbf16>, vector<32x128xf32> -> vector<32x128xf32>
    %16 = arith.addf %10, %15 : vector<32x128xf32>
    %cst_17 = arith.constant dense<0.000000e+00> : vector<128xf32>
    %17 = vector.multi_reduction <add>, %16, %cst_17 [0] : vector<32x128xf32> to vector<128xf32>
    %18 = vector.shape_cast %17 : vector<128xf32> to vector<1x128xf32>
    %19 = arith.mulf %16, %16 : vector<32x128xf32>
    %cst_18 = arith.constant dense<0.000000e+00> : vector<128xf32>
    %20 = vector.multi_reduction <add>, %19, %cst_18 [0] : vector<32x128xf32> to vector<128xf32>
    %21 = vector.shape_cast %20 : vector<128xf32> to vector<1x128xf32>
    %22 = tpu.concatenate %18, %21 in 0 : vector<1x128xf32>, vector<1x128xf32> -> vector<2x128xf32>
    %23 = vector.extract_strided_slice %22 {offsets = [0, 0], sizes = [2, 64], strides = [1, 1]} : vector<2x128xf32> to vector<2x64xf32>
    %24 = vector.extract_strided_slice %22 {offsets = [0, 64], sizes = [2, 64], strides = [1, 1]} : vector<2x128xf32> to vector<2x64xf32>
    %25 = arith.addf %23, %24 : vector<2x64xf32>
    %26 = vector.extract_strided_slice %25 {offsets = [0, 0], sizes = [2, 32], strides = [1, 1]} : vector<2x64xf32> to vector<2x32xf32>
    %27 = vector.extract_strided_slice %25 {offsets = [0, 32], sizes = [2, 32], strides = [1, 1]} : vector<2x64xf32> to vector<2x32xf32>
    %28 = arith.addf %26, %27 : vector<2x32xf32>
    %29 = vector.extract_strided_slice %28 {offsets = [0, 0], sizes = [2, 16], strides = [1, 1]} : vector<2x32xf32> to vector<2x16xf32>
    %30 = vector.extract_strided_slice %28 {offsets = [0, 16], sizes = [2, 16], strides = [1, 1]} : vector<2x32xf32> to vector<2x16xf32>
    %31 = arith.addf %29, %30 : vector<2x16xf32>
    %32 = vector.extract_strided_slice %31 {offsets = [0, 0], sizes = [2, 8], strides = [1, 1]} : vector<2x16xf32> to vector<2x8xf32>
    %33 = vector.extract_strided_slice %31 {offsets = [0, 8], sizes = [2, 8], strides = [1, 1]} : vector<2x16xf32> to vector<2x8xf32>
    %34 = arith.addf %32, %33 : vector<2x8xf32>
    %35 = vector.extract_strided_slice %34 {offsets = [0, 0], sizes = [1, 8], strides = [1, 1]} : vector<2x8xf32> to vector<1x8xf32>
    %cst_19 = arith.constant 0.001953125 : f32
    %36 = vector.broadcast %cst_19 : f32 to vector<1x8xf32>
    %37 = arith.mulf %35, %36 : vector<1x8xf32>
    %38 = vector.extract_strided_slice %34 {offsets = [1, 0], sizes = [1, 8], strides = [1, 1]} : vector<2x8xf32> to vector<1x8xf32>
    %cst_20 = arith.constant 0.001953125 : f32
    %39 = vector.broadcast %cst_20 : f32 to vector<1x8xf32>
    %40 = arith.mulf %38, %39 : vector<1x8xf32>
    %41 = arith.mulf %37, %37 : vector<1x8xf32>
    %42 = arith.subf %40, %41 : vector<1x8xf32>
    %c0_21 = arith.constant 0 : index
    %c0_22 = arith.constant 0 : index
    %43 = vector.load %arg3[%c0_21, %c0_22] : memref<1x8xf32, #tpu.memory_space<vmem>>, vector<1x8xf32>
    %cst_23 = arith.constant 9.99999974E-6 : f32
    %44 = vector.broadcast %cst_23 : f32 to vector<1x8xf32>
    %45 = arith.addf %42, %44 : vector<1x8xf32>
    %46 = math.rsqrt %45 : vector<1x8xf32>
    %47 = arith.mulf %43, %46 : vector<1x8xf32>
    %c0_24 = arith.constant 0 : index
    %c0_25 = arith.constant 0 : index
    %48 = vector.load %arg4[%c0_24, %c0_25] : memref<1x8xf32, #tpu.memory_space<vmem>>, vector<1x8xf32>
    %49 = arith.mulf %37, %47 : vector<1x8xf32>
    %50 = arith.subf %48, %49 : vector<1x8xf32>
    %51 = tpu.concatenate %47, %50 in 0 : vector<1x8xf32>, vector<1x8xf32> -> vector<2x8xf32>
    %52 = tpu.concatenate %51, %51 in 1 : vector<2x8xf32>, vector<2x8xf32> -> vector<2x16xf32>
    %53 = tpu.concatenate %52, %52 in 1 : vector<2x16xf32>, vector<2x16xf32> -> vector<2x32xf32>
    %54 = tpu.concatenate %53, %53 in 1 : vector<2x32xf32>, vector<2x32xf32> -> vector<2x64xf32>
    %55 = tpu.concatenate %54, %54 in 1 : vector<2x64xf32>, vector<2x64xf32> -> vector<2x128xf32>
    %56 = vector.extract_strided_slice %55 {offsets = [0, 0], sizes = [1, 128], strides = [1, 1]} : vector<2x128xf32> to vector<1x128xf32>
    %57 = vector.broadcast %56 : vector<1x128xf32> to vector<32x128xf32>
    %58 = arith.mulf %16, %57 : vector<32x128xf32>
    %59 = vector.extract_strided_slice %55 {offsets = [1, 0], sizes = [1, 128], strides = [1, 1]} : vector<2x128xf32> to vector<1x128xf32>
    %60 = vector.broadcast %59 : vector<1x128xf32> to vector<32x128xf32>
    %61 = arith.addf %58, %60 : vector<32x128xf32>
    %cst_26 = arith.constant 0.000000e+00 : f32
    %62 = vector.broadcast %cst_26 : f32 to vector<32x128xf32>
    %63 = arith.maximumf %61, %62 : vector<32x128xf32>
    %cst_27 = arith.constant 0.000000e+00 : bf16
    %64 = vector.broadcast %cst_27 : bf16 to vector<2x1x128xbf16>
    %c0_28 = arith.constant 0 : index
    %c0_29 = arith.constant 0 : index
    %c0_30 = arith.constant 0 : index
    %65 = vector.load %arg8[%c0_28, %c0_29, %c0_30] : memref<2x18x128xbf16, #tpu.memory_space<vmem>>, vector<2x1x128xbf16>
    tpu.vector_store %arg8[%c0_28, %c0_29, %c0_30], %64 {strides = array<i32>} : memref<2x18x128xbf16, #tpu.memory_space<vmem>>, vector<2x1x128xbf16>,
    %c0_31 = arith.constant 0 : index
    %c17 = arith.constant 17 : index
    %c0_32 = arith.constant 0 : index
    %66 = vector.load %arg8[%c0_31, %c17, %c0_32] : memref<2x18x128xbf16, #tpu.memory_space<vmem>>, vector<2x1x128xbf16>
    tpu.vector_store %arg8[%c0_31, %c17, %c0_32], %64 {strides = array<i32>} : memref<2x18x128xbf16, #tpu.memory_space<vmem>>, vector<2x1x128xbf16>,
    %67 = arith.truncf %63 : vector<32x128xf32> to vector<32x128xbf16>
    %68 = vector.shape_cast %67 : vector<32x128xbf16> to vector<2x16x128xbf16>
    %c0_33 = arith.constant 0 : index
    %c1_34 = arith.constant 1 : index
    %c0_35 = arith.constant 0 : index
    %69 = vector.load %arg8[%c0_33, %c1_34, %c0_35] : memref<2x18x128xbf16, #tpu.memory_space<vmem>>, vector<2x16x128xbf16>
    tpu.vector_store %arg8[%c0_33, %c1_34, %c0_35], %68 {strides = array<i32>} : memref<2x18x128xbf16, #tpu.memory_space<vmem>>, vector<2x16x128xbf16>,
    %c0_36 = arith.constant 0 : index
    %c0_37 = arith.constant 0 : index
    %c0_38 = arith.constant 0 : index
    %70 = vector.load %arg8[%c0_36, %c0_37, %c0_38] : memref<2x18x128xbf16, #tpu.memory_space<vmem>>, vector<2x16x128xbf16>
    %71 = vector.shape_cast %70 : vector<2x16x128xbf16> to vector<32x128xbf16>
    %c0_39 = arith.constant 0 : index
    %c0_40 = arith.constant 0 : index
    %c0_41 = arith.constant 0 : index
    %72 = vector.load %arg2[%c0_39, %c0_40, %c0_41] : memref<3x128x128xbf16, #tpu.memory_space<vmem>>, vector<1x128x128xbf16>
    %73 = vector.shape_cast %72 : vector<1x128x128xbf16> to vector<128x128xbf16>
    %cst_42 = arith.constant dense<0.000000e+00> : vector<32x128xf32>
    %74 = tpu.matmul %71, %73, %cst_42 {dimension_numbers = #tpu.dot_dimension_numbers<[1], [0], [0], [1], [0, 0, 1, 1], [], []>} : vector<32x128xbf16>, vector<128x128xbf16>, vector<32x128xf32> -> vector<32x128xf32>
    %c0_43 = arith.constant 0 : index
    %c1_44 = arith.constant 1 : index
    %c0_45 = arith.constant 0 : index
    %75 = vector.load %arg8[%c0_43, %c1_44, %c0_45] : memref<2x18x128xbf16, #tpu.memory_space<vmem>>, vector<2x16x128xbf16>
    %76 = vector.shape_cast %75 : vector<2x16x128xbf16> to vector<32x128xbf16>
    %c1_46 = arith.constant 1 : index
    %c0_47 = arith.constant 0 : index
    %c0_48 = arith.constant 0 : index
    %77 = vector.load %arg2[%c1_46, %c0_47, %c0_48] : memref<3x128x128xbf16, #tpu.memory_space<vmem>>, vector<1x128x128xbf16>
    %78 = vector.shape_cast %77 : vector<1x128x128xbf16> to vector<128x128xbf16>
    %cst_49 = arith.constant dense<0.000000e+00> : vector<32x128xf32>
    %79 = tpu.matmul %76, %78, %cst_49 {dimension_numbers = #tpu.dot_dimension_numbers<[1], [0], [0], [1], [0, 0, 1, 1], [], []>} : vector<32x128xbf16>, vector<128x128xbf16>, vector<32x128xf32> -> vector<32x128xf32>
    %80 = arith.addf %74, %79 : vector<32x128xf32>
    %c0_50 = arith.constant 0 : index
    %c2_51 = arith.constant 2 : index
    %c0_52 = arith.constant 0 : index
    %81 = vector.load %arg8[%c0_50, %c2_51, %c0_52] : memref<2x18x128xbf16, #tpu.memory_space<vmem>>, vector<2x16x128xbf16>
    %82 = vector.shape_cast %81 : vector<2x16x128xbf16> to vector<32x128xbf16>
    %c2_53 = arith.constant 2 : index
    %c0_54 = arith.constant 0 : index
    %c0_55 = arith.constant 0 : index
    %83 = vector.load %arg2[%c2_53, %c0_54, %c0_55] : memref<3x128x128xbf16, #tpu.memory_space<vmem>>, vector<1x128x128xbf16>
    %84 = vector.shape_cast %83 : vector<1x128x128xbf16> to vector<128x128xbf16>
    %cst_56 = arith.constant dense<0.000000e+00> : vector<32x128xf32>
    %85 = tpu.matmul %82, %84, %cst_56 {dimension_numbers = #tpu.dot_dimension_numbers<[1], [0], [0], [1], [0, 0, 1, 1], [], []>} : vector<32x128xbf16>, vector<128x128xbf16>, vector<32x128xf32> -> vector<32x128xf32>
    %86 = arith.addf %80, %85 : vector<32x128xf32>
    %cst_57 = arith.constant dense<0.000000e+00> : vector<128xf32>
    %87 = vector.multi_reduction <add>, %86, %cst_57 [0] : vector<32x128xf32> to vector<128xf32>
    %88 = vector.shape_cast %87 : vector<128xf32> to vector<1x128xf32>
    %89 = arith.mulf %86, %86 : vector<32x128xf32>
    %cst_58 = arith.constant dense<0.000000e+00> : vector<128xf32>
    %90 = vector.multi_reduction <add>, %89, %cst_58 [0] : vector<32x128xf32> to vector<128xf32>
    %91 = vector.shape_cast %90 : vector<128xf32> to vector<1x128xf32>
    %92 = tpu.concatenate %88, %91 in 0 : vector<1x128xf32>, vector<1x128xf32> -> vector<2x128xf32>
    %93 = vector.extract_strided_slice %92 {offsets = [0, 0], sizes = [2, 64], strides = [1, 1]} : vector<2x128xf32> to vector<2x64xf32>
    %94 = vector.extract_strided_slice %92 {offsets = [0, 64], sizes = [2, 64], strides = [1, 1]} : vector<2x128xf32> to vector<2x64xf32>
    %95 = arith.addf %93, %94 : vector<2x64xf32>
    %96 = vector.extract_strided_slice %95 {offsets = [0, 0], sizes = [2, 32], strides = [1, 1]} : vector<2x64xf32> to vector<2x32xf32>
    %97 = vector.extract_strided_slice %95 {offsets = [0, 32], sizes = [2, 32], strides = [1, 1]} : vector<2x64xf32> to vector<2x32xf32>
    %98 = arith.addf %96, %97 : vector<2x32xf32>
    %99 = vector.extract_strided_slice %98 {offsets = [0, 0], sizes = [2, 16], strides = [1, 1]} : vector<2x32xf32> to vector<2x16xf32>
    %100 = vector.extract_strided_slice %98 {offsets = [0, 16], sizes = [2, 16], strides = [1, 1]} : vector<2x32xf32> to vector<2x16xf32>
    %101 = arith.addf %99, %100 : vector<2x16xf32>
    %102 = vector.extract_strided_slice %101 {offsets = [0, 0], sizes = [2, 8], strides = [1, 1]} : vector<2x16xf32> to vector<2x8xf32>
    %103 = vector.extract_strided_slice %101 {offsets = [0, 8], sizes = [2, 8], strides = [1, 1]} : vector<2x16xf32> to vector<2x8xf32>
    %104 = arith.addf %102, %103 : vector<2x8xf32>
    %105 = vector.extract_strided_slice %104 {offsets = [0, 0], sizes = [1, 8], strides = [1, 1]} : vector<2x8xf32> to vector<1x8xf32>
    %cst_59 = arith.constant 0.001953125 : f32
    %106 = vector.broadcast %cst_59 : f32 to vector<1x8xf32>
    %107 = arith.mulf %105, %106 : vector<1x8xf32>
    %108 = vector.extract_strided_slice %104 {offsets = [1, 0], sizes = [1, 8], strides = [1, 1]} : vector<2x8xf32> to vector<1x8xf32>
    %cst_60 = arith.constant 0.001953125 : f32
    %109 = vector.broadcast %cst_60 : f32 to vector<1x8xf32>
    %110 = arith.mulf %108, %109 : vector<1x8xf32>
    %111 = arith.mulf %107, %107 : vector<1x8xf32>
    %112 = arith.subf %110, %111 : vector<1x8xf32>
    %c0_61 = arith.constant 0 : index
    %c0_62 = arith.constant 0 : index
    %113 = vector.load %arg5[%c0_61, %c0_62] : memref<1x8xf32, #tpu.memory_space<vmem>>, vector<1x8xf32>
    %cst_63 = arith.constant 9.99999974E-6 : f32
    %114 = vector.broadcast %cst_63 : f32 to vector<1x8xf32>
    %115 = arith.addf %112, %114 : vector<1x8xf32>
    %116 = math.rsqrt %115 : vector<1x8xf32>
    %117 = arith.mulf %113, %116 : vector<1x8xf32>
    %c0_64 = arith.constant 0 : index
    %c0_65 = arith.constant 0 : index
    %118 = vector.load %arg6[%c0_64, %c0_65] : memref<1x8xf32, #tpu.memory_space<vmem>>, vector<1x8xf32>
    %119 = arith.mulf %107, %117 : vector<1x8xf32>
    %120 = arith.subf %118, %119 : vector<1x8xf32>
    %121 = tpu.concatenate %117, %120 in 0 : vector<1x8xf32>, vector<1x8xf32> -> vector<2x8xf32>
    %122 = tpu.concatenate %121, %121 in 1 : vector<2x8xf32>, vector<2x8xf32> -> vector<2x16xf32>
    %123 = tpu.concatenate %122, %122 in 1 : vector<2x16xf32>, vector<2x16xf32> -> vector<2x32xf32>
    %124 = tpu.concatenate %123, %123 in 1 : vector<2x32xf32>, vector<2x32xf32> -> vector<2x64xf32>
    %125 = tpu.concatenate %124, %124 in 1 : vector<2x64xf32>, vector<2x64xf32> -> vector<2x128xf32>
    %126 = vector.extract_strided_slice %125 {offsets = [0, 0], sizes = [1, 128], strides = [1, 1]} : vector<2x128xf32> to vector<1x128xf32>
    %127 = vector.broadcast %126 : vector<1x128xf32> to vector<32x128xf32>
    %128 = arith.mulf %86, %127 : vector<32x128xf32>
    %129 = vector.extract_strided_slice %125 {offsets = [1, 0], sizes = [1, 128], strides = [1, 1]} : vector<2x128xf32> to vector<1x128xf32>
    %130 = vector.broadcast %129 : vector<1x128xf32> to vector<32x128xf32>
    %131 = arith.addf %128, %130 : vector<32x128xf32>
    %cst_66 = arith.constant 0.000000e+00 : f32
    %132 = vector.broadcast %cst_66 : f32 to vector<32x128xf32>
    %133 = arith.maximumf %131, %132 : vector<32x128xf32>
    %c0_67 = arith.constant 0 : index
    %c0_68 = arith.constant 0 : index
    %134 = vector.load %arg7[%c0_67, %c0_68] : memref<32x128xf32, #tpu.memory_space<vmem>>, vector<32x128xf32>
    tpu.vector_store %arg7[%c0_67, %c0_68], %133 {strides = array<i32>} : memref<32x128xf32, #tpu.memory_space<vmem>>, vector<32x128xf32>,
    return
  }
}

</mosaic_0001>

<bundles_post_ra>
// kernel: double_conv_forward.1
= control target key start
LH: loop header
LB: loop body
LE: loop exit
PB: predicated region body
PF: predicated region fallthrough
CT: control target
= control target key end

     0   :  { %vm41_vm0 = vsmask.f32 3328  ;;  %vm42_vm1 = vsmask.f32 7440  ;;  %vm131_vm2 = vcmask 523264   ;;  %vm282_vm3 = vcmask 1042432   ;;  %s1898_s1 = inlined_call_operand.vmem [shape: bf16[3,64,128], index: 1, kind: input, shape index: {}]   ;;  %s1899_s0 = inlined_call_operand.vmem [shape: bf16[2,18,64], index: 0, kind: input, shape index: {}]   ;;  %s1900_s3 = inlined_call_operand.vmem [shape: f32[1,8], index: 3, kind: input, shape index: {}]   ;;  %s1901_s4 = inlined_call_operand.vmem [shape: f32[1,8], index: 4, kind: input, shape index: {}]   ;;  %s1902_s2 = inlined_call_operand.vmem [shape: bf16[3,128,128], index: 2, kind: input, shape index: {}]   ;;  %s1903_s5 = inlined_call_operand.vmem [shape: f32[1,8], index: 5, kind: input, shape index: {}]   ;;  %s1904_s6 = inlined_call_operand.vmem [shape: f32[1,8], index: 6, kind: input, shape index: {}]   ;;  %s1905_s7 = inlined_call_operand.vmem [shape: f32[32,128], index: 7, kind: output, shape index: {}]  }
   0x1   :  { %v1449_v0 = vld [vmem:[%s1898_s1 + $0x38] sm:$0xff]   ;;  %v1451_v2 = vld [vmem:[%s1898_s1 + $0x30] sm:$0xff]   ;;  %v1453_v4 = vld [vmem:[%s1898_s1 + $0x28] sm:$0xff]   ;;  %vm283_vm5 = vcmask 1046532   ;;  %vm419_vm7 = vcmask 1040384   ;;  %s1495_s18 = smov 112  }
   0x2   :  { %v1450_v1 = vld [vmem:[%s1898_s1 + $0x18] sm:$0xff]   ;;  %1345 = vmatprep.subr.bf16.mxu0 %v1449_v0  ;;  %v1452_v3 = vld [vmem:[%s1898_s1 + $0x10] sm:$0xff]   ;;  %v1454_v5 = vld [vmem:[%s1898_s1 + $0x8] sm:$0xff]   ;;  %vm522_vm8 = vsmask.f32 256  ;;  %s1496_s19 = smov 120  }
   0x3   :  { %1357 = vmatprep.subr.bf16.mxu1 %v1450_v1  ;;  %1346 = vmatpush3.bf16.msra.mxu0 %v1449_v0  ;;  %v1455_v6 = vld [vmem:[%s1898_s1 + $0x20] sm:$0xff]   ;;  %v39_v10 = vld [vmem:[%s1899_s0 + $0x8] sm:$0x1]  ;;  %v29_v15 = vld [vmem:[%s1899_s0 + $0xc] sm:$0xf]  ;;  %s1498_s24 = smov 8  }
   0x4   :  { %1358 = vmatpush3.bf16.msra.mxu1 %v1450_v1  ;;  %1347 = vmatprep.subr.bf16.mxu0 %v1451_v2  ;;  %v1456_v7 = vld [vmem:[%s1898_s1] sm:$0xff]   ;;  %v64_v16 = vshll.u32 %v39_v10, 16  ;;  %v1580_v18 = vld [vmem:[%s1899_s0 + $0x10] sm:$0xf]  ;;  %v1585_v19 = vld [vmem:[%s1899_s0 + $0x14] sm:$0x1] }
   0x5   :  { %1359 = vmatprep.subr.bf16.mxu1 %v1452_v3  ;;  %v27_v8 = vld [vmem:[%s1899_s0] sm:$0xf]  ;;  %v28_v9 = vld [vmem:[%s1899_s0 + $0x4] sm:$0xf]  ;;  %v69_v25 = vshrl.u32 %v29_v15, 16  ;;  %v72_v26 = vshll.u32 %v29_v15, 16  ;;  %vm1596_vm4 = vmor %vm41_vm0, %vm42_vm1  ;;  %v1200_v42 = vcombine.low %v29_v15, %v1580_v18 }
   0x6   :  { %v45_v11 = vshrl.u32 %v27_v8, 16  ;;  %v48_v12 = vshll.u32 %v27_v8, 16  ;;  %v54_v13 = vshll.u32 %v28_v9, 16  ;;  %v58_v14 = vshrl.u32 %v28_v9, 16  ;;  %v1459_v32 = vld [vmem:[%s1898_s1 + $0x58] sm:$0xff]   ;;  %vm1610_vm6 = vmor %vm282_vm3, %vm283_vm5  ;;  %v1460_v61 = vld [vmem:[%s1898_s1 + $0x50] sm:$0xff]  }
   0x7   :  { %1348 = vmatpush3.bf16.msra.mxu0 %v1451_v2  ;;  %v1199_v17 = vcombine.low %v27_v8, %v28_v9  ;;  %v66_v24 = vrot.slane %v64_v16, 5  ;;  %v78_v27 = vshll.u32 %v1580_v18, 16  ;;  %v82_v30 = vshrl.u32 %v1580_v18, 16  ;;  %v276_v48 = vld [vmem:[%s1899_s0] sm:$0xe]  ;;  %v1461_v63 = vld [vmem:[%s1898_s1 + $0x48] sm:$0xff]   ;;  %vm1647_vm9 = vmand %vm419_vm7, %vm522_vm8 }
   0x8   :  { %1360 = vmatpush3.bf16.msra.mxu1 %v1452_v3  ;;  %1349 = vmatprep.subr.bf16.mxu0 %v1453_v4  ;;  %v47_v20 = vrot.slane %v45_v11, 4  ;;  %v50_v21 = vrot.slane %v48_v12, 5  ;;  %v56_v22 = vrot.slane %v54_v13, 5  ;;  %v60_v23 = vrot.slane %v58_v14, 4  ;;  %v277_v0 = vld [vmem:[%s1899_s0 + $0xc] sm:$0xe] }
   0x9   :  { %1361 = vmatprep.subr.bf16.mxu1 %v1454_v5  ;;  %1365 = vmatprep.mubr.msk.bf16.mxu1 %vm131_vm2, %v1199_v17  ;;  %v88_v31 = vshll.u32 %v1585_v19, 16  ;;  %v71_v34 = vrot.slane %v69_v25, 4  ;;  %v74_v35 = vrot.slane %v72_v26, 5  ;;  %v80_v36 = vrot.slane %v78_v27, 5  ;;  %v524_v8 = vld [vmem:[#allocation2] sm:$0x1] }
   0xa   :  { %v51_v28 = vor.u32 %v50_v21, %v47_v20  ;;  %v61_v29 = vor.u32 %v60_v23, %v56_v22  ;;  %v84_v39 = vrot.slane %v82_v30, 4  ;;  %v290_v40 = vrot.slane %v39_v10, 5  ;;  %v527_v10 = vld [vmem:[#allocation2 + $0xc] sm:$0x1]  ;;  %v532_v11 = vld [vmem:[#allocation2 + $0x8] sm:$0x1] }
   0xb   :  { %1350 = vmatpush3.bf16.msra.mxu0 %v1453_v4  ;;  %v75_v41 = vor.u32 %v74_v35, %v71_v34  ;;  %v287_v43 = vrot.slane %v28_v9, 5  ;;  %v90_v47 = vrot.slane %v88_v31, 5  ;;  %v1207_v52 = vrot.slane %v276_v48, 9  ;;  %v1462_v4 = vld [vmem:[%s1898_s1 + $0x40] sm:$0xff]   ;;  %v535_v14 = vld [vmem:[#allocation2 + $0x14] sm:$0x1] }
   0xc   :  { %1362 = vmatpush3.bf16.msra.mxu1 %v1454_v5  ;;  %1351 = vmatprep.subr.bf16.mxu0 %v1455_v6  ;;  %v52_v37 = vrot.slane %v51_v28, 4  ;;  %v62_v38 = vrot.slane %v61_v29, 4  ;;  %v85_v46 = vor.u32 %v84_v39, %v80_v36  ;;  %v294_v62 = vrot.slane %v1580_v18, 5  ;;  %s1493_s0 = smov 64   ;;  %s1494_s1 = smov 96   ;;  %v1484_v33 = vld [vmem:[%s1902_s2 + $0xa0] sm:$0xff]  }
   0xd   :  { %1363 = vmatprep.subr.bf16.mxu1 %v1456_v7  ;;  %v76_v51 = vrot.slane %v75_v41, 4  ;;  %v289_v53 = vrot.slane %v287_v43, 4  ;;  %v288_v56 = vsel %vm1610_vm6, %v1207_v52, %v287_v43  ;;  %v297_v1 = vrot.slane %v1585_v19, 5  ;;  %s1500_s26 = smov 32  }
   0xe   :  { %v57_v44 = vsel %vm1596_vm4, %v52_v37, %v56_v22  ;;  %v67_v45 = vsel %vm1596_vm4, %v62_v38, %v66_v24  ;;  %v86_v54 = vrot.slane %v85_v46, 4  ;;  %v1208_v2 = vrot.slane %v277_v0, 9 }
   0xf   :  { %1352 = vmatpush3.bf16.msra.mxu0 %v1455_v6  ;;  %v1191_v50 = vcombine.low %v57_v44, %v67_v45  ;;  %v81_v55 = vsel %vm1596_vm4, %v76_v51, %v80_v36  ;;  %v291_v57 = vsel %vm1610_vm6, %v289_v53, %v290_v40  ;;  %v296_v3 = vrot.slane %v294_v62, 4 }
  0x10   :  { %1364 = vmatpush3.bf16.msra.mxu1 %v1456_v7  ;;  %1369 = vmatprep.subr.bf16.mxu0 %v1459_v32  ;;  %v91_v58 = vsel %vm1596_vm4, %v86_v54, %v90_v47  ;;  %v1217_v59 = vcombine.low %v288_v56, %v291_v57  ;;  %v295_v5 = vsel %vm1610_vm6, %v1208_v2, %v294_v62  ;;  %vm530_vm10 = vsmask.f32 7938 }
  0x11   :  { %1353 = vmatprep.mubr.msk.bf16.mxu0 %vm131_vm2, %v1191_v50  ;;  %v1192_v60 = vcombine.low %v81_v55, %v91_v58  ;;  %v298_v6 = vsel %vm1610_vm6, %v296_v3, %v297_v1  ;;  %v525_v12 = vsel %vm1647_vm9, 0, %v524_v8  ;;  %v528_v13 = vsel %vm1647_vm9, 0, %v527_v10  ;;  %vm531_vm11 = vmand %vm419_vm7, %vm530_vm10 }
  0x12   :  { %v1218_v7 = vcombine.low %v295_v5, %v298_v6  ;;  %526 = vst [vmem:[#allocation2] sm:$0x1] %v525_v12  ;;  %529 = vst [vmem:[#allocation2 + $0xc] sm:$0x1] %v528_v13  ;;  %v533_v15 = vsel %vm531_vm11, 0, %v532_v11  ;;  %v536_v16 = vsel %vm531_vm11, 0, %v535_v14  ;;  %v454_v14 = vlaneseq }
  0x13   :  { %1366 = vmatmul.mubr.msk.bf16.vlgmr.msra.gmra.mxu1 %vm131_vm2, %v1200_v42  ;;  %1354 = vmatmul.mubr.msk.bf16.vlgmr.msra.gmra.mxu0 %vm131_vm2, %v1192_v60  ;;  %534 = vst [vmem:[#allocation2 + $0x8] sm:$0x1] %v533_v15  ;;  %537 = vst [vmem:[#allocation2 + $0x14] sm:$0x1] %v536_v16  ;;  %v1497_v12 = vmov 1966171168  }
  0x14   :  { %1370 = vmatpush3.bf16.msra.mxu0 %v1459_v32  ;;  %1377 = vmatprep.mubr.msk.bf16.mxu0 %vm131_vm2, %v1217_v59  ;;  %v452_v13 = vunpack.c.l.s4 %v1497_v12  ;;  %v1682_v16 = vshrl.u32 %v454_v14, 7  ;;  %vm482_vm12 = vcmask 64512   ;;  %vm488_vm13 = vcmask 130048  }
  0x15   :  { %1371 = vmatprep.subr.bf16.mxu0 %v1460_v61  ;;  %vm494_vm14 = vcmask 261120   ;;  %vm550_vm15 = vsmask.f32 4368  ;;  %vm592_vm0 = vcmask 1043456  }
  0x16   :  { %v453_v15 = vunpack.c.0.s8 %v452_v13  ;;  %vm1771_vm1 = vmor %vm522_vm8, %vm550_vm15 }
  0x17   :  { %vm1776_vm3 = vmand %vm592_vm0, %vm530_vm10 }
  0x18   :  { %1372 = vmatpush3.bf16.msra.mxu0 %v1460_v61 }
  0x19   :  { %1373 = vmatprep.subr.bf16.mxu0 %v1461_v63 }
  0x1c   :  { %1374 = vmatpush3.bf16.msra.mxu0 %v1461_v63 }
  0x1d   :  { %1375 = vmatprep.subr.bf16.mxu0 %v1462_v4 }
  0x20   :  { %1376 = vmatpush3.bf16.msra.mxu0 %v1462_v4 }
  0x23   :  { %1378 = vmatmul.mubr.msk.bf16.vlgmr.msra.gmra.mxu0 %vm131_vm2, %v1218_v7 }
  0xd3   :  { %v1355_v17 = vpop.f32.mrf.mxu0  ;;  %v1367_v18 = vpop.f32.mrf.mxu1 }
  0xd4   :  { %v270_v29 = vadd.f32 %v1367_v18, %v1355_v17  ;;  %v1685_v17 = vsub.s32 %v453_v15, %v1682_v16 }
  0xd5   :  { %v172_v19 = vpop.f32.mrf.mxu0  ;;  %v261_v20 = vpop.f32.mrf.mxu1 }
  0xd6   :  { %v262_v27 = vadd.f32 %v261_v20, %v172_v19 }
  0xd7   :  { %v1356_v21 = vpop.f32.mrf.mxu0  ;;  %v1368_v22 = vpop.f32.mrf.mxu1 }
  0xd8   :  { %v273_v34 = vadd.f32 %v1368_v22, %v1356_v21  ;;  %v447_v21 = vld [vmem:[%s1900_s3] sm:$0x1]  ;;  %s1499_s3 = smov 16  }
  0xd9   :  { %v175_v23 = vpop.f32.mrf.mxu0  ;;  %v264_v25 = vpop.f32.mrf.mxu1 }
  0xda   :  { %v265_v30 = vadd.f32 %v264_v25, %v175_v23 }
  0xe3   :  { %v1379_v24 = vpop.f32.mrf.mxu0 }
  0xe4   :  { %v1659_v35 = vadd.f32 %v1379_v24, %v270_v29  ;;  %v468_v24 = vld [vmem:[%s1901_s4] sm:$0x1] }
  0xe5   :  { %v378_v26 = vpop.f32.mrf.mxu0 }
  0xe6   :  { %v1657_v31 = vadd.f32 %v378_v26, %v262_v27  ;;  %v408_v41 = vmul.f32 %v1659_v35, %v1659_v35  ;;  %v1696_v26 = vsub.s32 0, %v1682_v16 }
  0xe7   :  { %v1380_v28 = vpop.f32.mrf.mxu0 }
  0xe8   :  { %v406_v37 = vmul.f32 %v1657_v31, %v1657_v31  ;;  %v1665_v38 = vadd.f32 %v1380_v28, %v273_v34  ;;  %v1463_v34 = vld [vmem:[%s1902_s2 + $0x38] sm:$0xff]  }
  0xe9   :  { %v381_v32 = vpop.f32.mrf.mxu0  ;;  %1401 = vmatprep.subr.bf16.mxu0 %v1463_v34 }
  0xea   :  { %v1661_v36 = vadd.f32 %v381_v32, %v265_v30  ;;  %v409_v44 = vmul.f32 %v1665_v38, %v1665_v38  ;;  %1402 = vmatpush3.bf16.msra.mxu0 %v1463_v34  ;;  %v601_v34 = vld [vmem:[#allocation2 + $0xc] sm:$0xf] }
  0xec   :  { %v397_v39 = vadd.f32 %v1661_v36, %v1657_v31  ;;  %v407_v40 = vmul.f32 %v1661_v36, %v1661_v36 }
  0xee   :  { %v398_v42 = vadd.f32 %v397_v39, %v1659_v35  ;;  %v410_v43 = vadd.f32 %v407_v40, %v406_v37  ;;  %v1464_v40 = vld [vmem:[%s1902_s2 + $0x30] sm:$0xff]  }
  0xef   :  { %1403 = vmatprep.subr.bf16.mxu0 %v1464_v40 }
  0xf0   :  { %v399_v45 = vadd.f32 %v398_v42, %v1665_v38  ;;  %v411_v46 = vadd.f32 %v410_v43, %v408_v41  ;;  %1404 = vmatpush3.bf16.msra.mxu0 %v1464_v40  ;;  %v1465_v41 = vld [vmem:[%s1902_s2 + $0x78] sm:$0xff]   ;;  %v1466_v42 = vld [vmem:[%s1902_s2 + $0x28] sm:$0xff]   ;;  %v1467_v43 = vld [vmem:[%s1902_s2 + $0x70] sm:$0xff]  }
  0xf1   :  { %1381 = vmatprep.subr.bf16.mxu1 %v1465_v41  ;;  %1405 = vmatprep.subr.bf16.mxu0 %v1466_v42 }
  0xf2   :  { %v400_v47 = vrot.slane %v399_v45, 4  ;;  %v412_v48 = vadd.f32 %v411_v46, %v409_v44  ;;  %1382 = vmatpush3.bf16.msra.mxu1 %v1465_v41  ;;  %v1468_v44 = vld [vmem:[%s1902_s2 + $0x20] sm:$0xff]  }
  0xf3   :  { %1383 = vmatprep.subr.bf16.mxu1 %v1467_v43 }
  0xf4   :  { %v401_v50 = vadd.f32 %v400_v47, %v399_v45  ;;  %v413_v51 = vrot.slane %v412_v48, 4  ;;  %1406 = vmatpush3.bf16.msra.mxu0 %v1466_v42  ;;  %v1469_v47 = vld [vmem:[%s1902_s2 + $0x68] sm:$0xff]  }
  0xf5   :  { %1407 = vmatprep.subr.bf16.mxu0 %v1468_v44 }
  0xf6   :  { %v402_v52 = vrot.slane %v401_v50, 2  ;;  %v414_v53 = vadd.f32 %v413_v51, %v412_v48  ;;  %1384 = vmatpush3.bf16.msra.mxu1 %v1467_v43  ;;  %v1470_v48 = vld [vmem:[%s1902_s2 + $0x18] sm:$0xff]   ;;  %v1472_v51 = vld [vmem:[%s1902_s2 + $0x10] sm:$0xff]  }
  0xf7   :  { %1385 = vmatprep.subr.bf16.mxu1 %v1469_v47 }
  0xf8   :  { %v403_v54 = vadd.f32 %v402_v52, %v401_v50  ;;  %v415_v55 = vrot.slane %v414_v53, 2  ;;  %1408 = vmatpush3.bf16.msra.mxu0 %v1468_v44  ;;  %v1471_v50 = vld [vmem:[%s1902_s2 + $0x60] sm:$0xff]   ;;  %v1473_v52 = vld [vmem:[%s1902_s2 + $0x58] sm:$0xff]  }
  0xf9   :  { %1409 = vmatprep.subr.bf16.mxu0 %v1470_v48 }
  0xfa   :  { %v404_v56 = vrot.slane %v403_v54, 1  ;;  %v416_v57 = vadd.f32 %v415_v55, %v414_v53  ;;  %1386 = vmatpush3.bf16.msra.mxu1 %v1469_v47  ;;  %v1474_v53 = vld [vmem:[%s1902_s2 + $0x8] sm:$0xff]   ;;  %v1476_v55 = vld [vmem:[%s1902_s2] sm:$0xff]  }
  0xfb   :  { %1387 = vmatprep.subr.bf16.mxu1 %v1471_v50 }
  0xfc   :  { %v417_v58 = vrot.slane %v416_v57, 1  ;;  %v405_v59 = vadd.f32 %v404_v56, %v403_v54  ;;  %1410 = vmatpush3.bf16.msra.mxu0 %v1470_v48  ;;  %v1475_v54 = vld [vmem:[%s1902_s2 + $0x50] sm:$0xff]   ;;  %v1478_v56 = vld [vmem:[%s1902_s2 + $0x48] sm:$0xff]  }
  0xfd   :  { %1411 = vmatprep.subr.bf16.mxu0 %v1472_v51 }
  0xfe   :  { %v418_v60 = vadd.f32 %v417_v58, %v416_v57  ;;  %1388 = vmatpush3.bf16.msra.mxu1 %v1471_v50  ;;  %v1480_v57 = vld [vmem:[%s1902_s2 + $0x40] sm:$0xff]   ;;  %v1758_v58 = vld [vmem:[%s1902_s2 + $0xb8] sm:$0xff]  }
  0xff   :  { %1389 = vmatprep.subr.bf16.mxu1 %v1473_v52 }
 0x100   :  { %v420_v61 = vsel %vm419_vm7, %v405_v59, %v418_v60  ;;  %1412 = vmatpush3.bf16.msra.mxu0 %v1472_v51  ;;  %v511_v59 = vsub.s32 1, %v1682_v16 }
 0x101   :  { %422 = vrot.lane.b32.xlu0 %v420_v61, %s1493_s0  ;;  %1413 = vmatprep.subr.bf16.mxu0 %v1474_v53 }
 0x102   :  { %1390 = vmatpush3.bf16.msra.mxu1 %v1473_v52 }
 0x103   :  { %1391 = vmatprep.subr.bf16.mxu1 %v1475_v54 }
 0x104   :  { %1414 = vmatpush3.bf16.msra.mxu0 %v1474_v53 }
 0x105   :  { %1415 = vmatprep.subr.bf16.mxu0 %v1476_v55 }
 0x106   :  { %1392 = vmatpush3.bf16.msra.mxu1 %v1475_v54 }
 0x107   :  { %1393 = vmatprep.subr.bf16.mxu1 %v1478_v56 }
 0x108   :  { %1416 = vmatpush3.bf16.msra.mxu0 %v1476_v55 }
 0x10a   :  { %1394 = vmatpush3.bf16.msra.mxu1 %v1478_v56 }
 0x10b   :  { %1395 = vmatprep.subr.bf16.mxu1 %v1480_v57 }
 0x10e   :  { %1396 = vmatpush3.bf16.msra.mxu1 %v1480_v57 }
 0x10f   :  { %1421 = vmatprep.subr.bf16.mxu1 %v1758_v58 }
 0x173   :  { %v423_v62 = vpop.permute.xlu0 %422 }
 0x174   :  { %v425_v63 = vadd.f32 %v423_v62, %v420_v61 }
 0x176   :  { %427 = vrot.lane.b32.xlu0 %v425_v63, %s1494_s1 }
 0x1e8   :  { %v428_v0 = vpop.permute.xlu0 %427 }
 0x1e9   :  { %v430_v1 = vadd.f32 %v428_v0, %v425_v63 }
 0x1eb   :  { %432 = vrot.lane.b32.xlu1 %v430_v1, %s1495_s18 }
 0x25d   :  { %v433_v2 = vpop.permute.xlu1 %432 }
 0x25e   :  { %v435_v3 = vadd.f32 %v433_v2, %v430_v1 }
 0x260   :  { %437 = vrot.lane.b32.xlu1 %v435_v3, %s1496_s19 }
 0x2d2   :  { %v438_v4 = vpop.permute.xlu1 %437 }
 0x2d3   :  { %v440_v5 = vadd.f32 %v438_v4, %v435_v3 }
 0x2d5   :  { %v441_v6 = vmul.f32 0.001953125, %v440_v5 }
 0x2d7   :  { %v442_v7 = vmul.f32 %v441_v6, %v441_v6 }
 0x2d9   :  { %v444_v8 = vrot.slane %v442_v7, 7 }
 0x2db   :  { %v446_v10 = vsub.f32 %v441_v6, %v444_v8 }
 0x2dd   :  { %v448_v11 = vadd.f32 1e-05, %v446_v10 }
 0x2df   :  { %1489 = vrsqrt.f32 %v448_v11 }
 0x2ec   :  { %v1490_v18 = vpop.eup %1489 }
 0x2ed   :  { %v457_v19 = vrot.slane %v1490_v18, %v1685_v17 }
 0x2ef   :  { %v458_v20 = vcombine.high %v457_v19, %v457_v19 }
 0x2f1   :  { %v465_v22 = vrot.slane %v458_v20, %v1685_v17  ;;  %v594_v20 = vld [vmem:[#allocation2] sm:$0xf] }
 0x2f3   :  { %v467_v23 = vmul.f32 %v465_v22, %v447_v21 }
 0x2f5   :  { %v469_v25 = vmul.f32 %v467_v23, %v441_v6 }
 0x2f7   :  { %v470_v27 = vsub.f32 %v468_v24, %v469_v25 }
 0x2f9   :  { %v475_v28 = vrot.slane %v470_v27, %v1696_v26  ;;  %v598_v27 = vld [vmem:[#allocation2 + $0x8] sm:$0x1] }
 0x2fb   :  { %v477_v29 = vsel %vm419_vm7, %v467_v23, %v475_v28 }
 0x2fc   :  { %479 = vrot.lane.b32.xlu0 %v477_v29, %s1498_s24 }
 0x36e   :  { %v480_v30 = vpop.permute.xlu0 %479 }
 0x36f   :  { %v483_v32 = vsel %vm482_vm12, %v477_v29, %v480_v30 }
 0x370   :  { %485 = vrot.lane.b32.xlu1 %v483_v32, %s1499_s3 }
 0x3e2   :  { %v486_v37 = vpop.permute.xlu1 %485 }
 0x3e3   :  { %v489_v39 = vsel %vm488_vm13, %v483_v32, %v486_v37  ;;  %v605_v37 = vld [vmem:[#allocation2 + $0x14] sm:$0x1] }
 0x3e4   :  { %491 = vrot.lane.b32.xlu0 %v489_v39, %s1500_s26 }
 0x456   :  { %v492_v45 = vpop.permute.xlu0 %491 }
 0x457   :  { %v495_v46 = vsel %vm494_vm14, %v489_v39, %v492_v45 }
 0x458   :  { %497 = vrot.lane.b32.xlu1 %v495_v46, %s1493_s0 }
 0x4ca   :  { %v498_v60 = vpop.permute.xlu1 %497 }
 0x4cb   :  { %v500_v61 = vsel %vm131_vm2, %v495_v46, %v498_v60 }
 0x4cc   :  { %v504_v62 = vrot.slane %v500_v61, %v1696_v26  ;;  %v512_v63 = vrot.slane %v500_v61, %v511_v59 }
 0x4ce   :  { %v505_v0 = vmul.f32 %v504_v62, %v1657_v31  ;;  %v506_v1 = vmul.f32 %v504_v62, %v1661_v36  ;;  %v507_v2 = vmul.f32 %v504_v62, %v1659_v35  ;;  %v508_v3 = vmul.f32 %v504_v62, %v1665_v38 }
 0x4d0   :  { %v513_v4 = vadd.f32 %v512_v63, %v505_v0  ;;  %v514_v5 = vadd.f32 %v512_v63, %v506_v1  ;;  %v515_v6 = vadd.f32 %v512_v63, %v507_v2  ;;  %v516_v7 = vadd.f32 %v512_v63, %v508_v3 }
 0x4d2   :  { %v517_v8 = vmax.f32 %v513_v4, 0.0  ;;  %v518_v10 = vmax.f32 %v514_v5, 0.0  ;;  %v519_v11 = vmax.f32 %v515_v6, 0.0  ;;  %v520_v12 = vmax.f32 %v516_v7, 0.0 }
 0x4d4   :  { %v1293_v13 = vpack.c.bf16 %v517_v8, %v517_v8  ;;  %v1294_v14 = vpack.c.bf16 %v518_v10, %v518_v10  ;;  %v1295_v15 = vpack.c.bf16 %v519_v11, %v519_v11  ;;  %v1296_v18 = vpack.c.bf16 %v520_v12, %v520_v12 }
 0x4d6   :  { %v553_v31 = vshrl.u32 %v1293_v13, 16  ;;  %v561_v36 = vshrl.u32 %v1294_v14, 16  ;;  %v570_v19 = vshrl.u32 %v1295_v15, 16  ;;  %v578_v35 = vshrl.u32 %v1296_v18, 16 }
 0x4d7   :  { %v556_v22 = vshll.u32 %v1293_v13, 16  ;;  %v564_v24 = vshll.u32 %v1294_v14, 16  ;;  %v573_v29 = vshll.u32 %v1295_v15, 16  ;;  %v581_v32 = vshll.u32 %v1296_v18, 16 }
 0x4d8   :  { %v555_v21 = vrot.slane %v553_v31, 7  ;;  %v563_v23 = vrot.slane %v561_v36, 7  ;;  %v572_v28 = vrot.slane %v570_v19, 7  ;;  %v580_v30 = vrot.slane %v578_v35, 7 }
 0x4da   :  { %v558_v39 = vor.u32 %v556_v22, %v555_v21  ;;  %v559_v40 = vrot.slane %v555_v21, 4  ;;  %v566_v41 = vor.u32 %v564_v24, %v563_v23  ;;  %v568_v42 = vrot.slane %v563_v23, 4 }
 0x4db   :  { %v575_v43 = vor.u32 %v573_v29, %v572_v28  ;;  %v576_v44 = vrot.slane %v572_v28, 4  ;;  %v583_v45 = vor.u32 %v581_v32, %v580_v30  ;;  %v585_v46 = vrot.slane %v580_v30, 4 }
 0x4dc   :  { %v567_v47 = vsel %vm1771_vm1, %v559_v40, %v566_v41  ;;  %v595_v48 = vsel %vm1776_vm3, %v558_v39, %v594_v20  ;;  %v599_v50 = vsel %vm1647_vm9, %v568_v42, %v598_v27 }
 0x4dd   :  { %v584_v51 = vsel %vm1771_vm1, %v576_v44, %v583_v45  ;;  %596 = vst [vmem:[#allocation2] sm:$0xf] %v595_v48  ;;  %597 = vst [vmem:[#allocation2 + $0x4] sm:$0xf] %v567_v47  ;;  %v602_v52 = vsel %vm1776_vm3, %v575_v43, %v601_v34  ;;  %v606_v53 = vsel %vm1647_vm9, %v585_v46, %v605_v37  ;;  %v1482_v45 = vld [vmem:[%s1902_s2 + $0xb0] sm:$0xff]   ;;  %v1483_v47 = vld [vmem:[%s1902_s2 + $0xa8] sm:$0xff]  }
 0x4de   :  { %600 = vst [vmem:[#allocation2 + $0x8] sm:$0x1] %v599_v50  ;;  %603 = vst [vmem:[#allocation2 + $0xc] sm:$0xf] %v602_v52  ;;  %v1485_v48 = vld [vmem:[%s1902_s2 + $0x98] sm:$0xff]   ;;  %v1487_v50 = vld [vmem:[%s1902_s2 + $0x88] sm:$0xff]  }
 0x4df   :  { %604 = vst [vmem:[#allocation2 + $0x10] sm:$0xf] %v584_v51  ;;  %607 = vst [vmem:[#allocation2 + $0x14] sm:$0x1] %v606_v53  ;;  %v1488_v52 = vld [vmem:[%s1902_s2 + $0x80] sm:$0xff]  }
 0x4e4   :  { %v608_v54 = vld [vmem:[#allocation2] sm:$0xf]  ;;  %v609_v55 = vld [vmem:[#allocation2 + $0x4] sm:$0xf] }
 0x4e5   :  { %v628_v56 = vld [vmem:[#allocation2 + $0x8] sm:$0x1]  ;;  %v631_v57 = vshrl.u32 %v608_v54, 16  ;;  %v634_v60 = vshll.u32 %v608_v54, 16  ;;  %v644_v61 = vshrl.u32 %v609_v55, 16  ;;  %v1255_v62 = vcombine.low %v608_v54, %v609_v55 }
 0x4e6   :  { %v610_v63 = vld [vmem:[#allocation2 + $0xc] sm:$0xf]  ;;  %v1792_v0 = vld [vmem:[#allocation2 + $0x10] sm:$0xf]  ;;  %v640_v3 = vshll.u32 %v609_v55, 16  ;;  %v650_v4 = vshll.u32 %v628_v56, 16 }
 0x4e7   :  { %v655_v1 = vshrl.u32 %v610_v63, 16  ;;  %v658_v2 = vshll.u32 %v610_v63, 16  ;;  %v633_v5 = vrot.slane %v631_v57, 4  ;;  %v636_v9 = vrot.slane %v634_v60, 5  ;;  %1417 = vmatprep.mubr.bf16.mxu0 %v1255_v62  ;;  %v629_v13 = vld [vmem:[#allocation2 + $0x14] sm:$0x1] }
 0x4e8   :  { %v668_v6 = vshrl.u32 %v1792_v0, 16  ;;  %v1256_v7 = vcombine.low %v610_v63, %v1792_v0  ;;  %v642_v11 = vrot.slane %v640_v3, 5  ;;  %v646_v12 = vrot.slane %v644_v61, 4  ;;  %v909_v20 = vld [vmem:[#allocation2] sm:$0xe] }
 0x4e9   :  { %v657_v8 = vrot.slane %v655_v1, 4  ;;  %v660_v10 = vrot.slane %v658_v2, 5  ;;  %v637_v14 = vor.u32 %v636_v9, %v633_v5  ;;  %v664_v15 = vshll.u32 %v1792_v0, 16  ;;  %v910_v53 = vld [vmem:[#allocation2 + $0xc] sm:$0xe] }
 0x4ea   :  { %1418 = vmatmul.mubr.bf16.vlgmr.msra.gmra.mxu0 %v1256_v7  ;;  %v670_v18 = vrot.slane %v668_v6, 4  ;;  %v647_v31 = vor.u32 %v646_v12, %v642_v11  ;;  %v674_v38 = vshll.u32 %v629_v13, 16  ;;  %v917_v21 = vrot.slane %v609_v55, 5 }
 0x4eb   :  { %v661_v36 = vor.u32 %v660_v10, %v657_v8  ;;  %v638_v19 = vrot.slane %v637_v14, 4  ;;  %v666_v35 = vrot.slane %v664_v15, 5  ;;  %v652_v23 = vrot.slane %v650_v4, 5 }
 0x4ec   :  { %v648_v22 = vrot.slane %v647_v31, 4  ;;  %v919_v28 = vrot.slane %v917_v21, 4  ;;  %v1265_v30 = vrot.slane %v909_v20, 9  ;;  %v920_v32 = vrot.slane %v628_v56, 5 }
 0x4ed   :  { %v662_v24 = vrot.slane %v661_v36, 4  ;;  %v643_v25 = vsel %vm1596_vm4, %v638_v19, %v642_v11  ;;  %v671_v27 = vor.u32 %v670_v18, %v666_v35  ;;  %v676_v40 = vrot.slane %v674_v38, 5 }
 0x4ee   :  { %v653_v29 = vsel %vm1596_vm4, %v648_v22, %v652_v23  ;;  %v921_v41 = vsel %vm1610_vm6, %v919_v28, %v920_v32  ;;  %v918_v44 = vsel %vm1610_vm6, %v1265_v30, %v917_v21  ;;  %v924_v51 = vrot.slane %v1792_v0, 5 }
 0x4ef   :  { %v1245_v34 = vcombine.low %v643_v25, %v653_v29  ;;  %v667_v37 = vsel %vm1596_vm4, %v662_v24, %v666_v35  ;;  %v672_v39 = vrot.slane %v671_v27, 4  ;;  %v1283_v46 = vcombine.low %v918_v44, %v921_v41 }
 0x4f0   :  { %v926_v54 = vrot.slane %v924_v51, 4  ;;  %v1266_v55 = vrot.slane %v910_v53, 9  ;;  %v927_v56 = vrot.slane %v629_v13, 5 }
 0x4f1   :  { %1397 = vmatprep.mubr.bf16.mxu1 %v1245_v34  ;;  %v677_v42 = vsel %vm1596_vm4, %v672_v39, %v676_v40 }
 0x4f2   :  { %v1246_v43 = vcombine.low %v667_v37, %v677_v42  ;;  %v928_v57 = vsel %vm1610_vm6, %v926_v54, %v927_v56  ;;  %v925_v60 = vsel %vm1610_vm6, %v1266_v55, %v924_v51 }
 0x4f3   :  { %v1284_v61 = vcombine.low %v925_v60, %v928_v57 }
 0x4f4   :  { %1398 = vmatmul.mubr.bf16.vlgmr.msra.gmra.mxu1 %v1246_v43 }
 0x4f5   :  { %1422 = vmatpush3.bf16.msra.mxu1 %v1758_v58  ;;  %1437 = vmatprep.mubr.bf16.mxu1 %v1283_v46  ;;  %v1486_v58 = vld [vmem:[%s1902_s2 + $0x90] sm:$0xff]  }
 0x4f6   :  { %1423 = vmatprep.subr.bf16.mxu1 %v1482_v45 }
 0x4f9   :  { %1424 = vmatpush3.bf16.msra.mxu1 %v1482_v45 }
 0x4fa   :  { %1425 = vmatprep.subr.bf16.mxu1 %v1483_v47 }
 0x4fd   :  { %1426 = vmatpush3.bf16.msra.mxu1 %v1483_v47 }
 0x4fe   :  { %1427 = vmatprep.subr.bf16.mxu1 %v1484_v33 }
 0x501   :  { %1428 = vmatpush3.bf16.msra.mxu1 %v1484_v33 }
 0x502   :  { %1429 = vmatprep.subr.bf16.mxu1 %v1485_v48 }
 0x505   :  { %1430 = vmatpush3.bf16.msra.mxu1 %v1485_v48 }
 0x506   :  { %1431 = vmatprep.subr.bf16.mxu1 %v1486_v58 }
 0x509   :  { %1432 = vmatpush3.bf16.msra.mxu1 %v1486_v58 }
 0x50a   :  { %1433 = vmatprep.subr.bf16.mxu1 %v1487_v50 }
 0x50d   :  { %1434 = vmatpush3.bf16.msra.mxu1 %v1487_v50 }
 0x50e   :  { %1435 = vmatprep.subr.bf16.mxu1 %v1488_v52 }
 0x511   :  { %1436 = vmatpush3.bf16.msra.mxu1 %v1488_v52 }
 0x514   :  { %1438 = vmatmul.mubr.bf16.vlgmr.msra.gmra.mxu1 %v1284_v61  ;;  %v1104_v61 = vld [vmem:[%s1903_s5] sm:$0x1] }
 0x5aa   :  { %v1419_v0 = vpop.f32.mrf.mxu0 }
 0x5ac   :  { %v894_v2 = vpop.f32.mrf.mxu0 }
 0x5ae   :  { %v1420_v4 = vpop.f32.mrf.mxu0 }
 0x5b0   :  { %v897_v7 = vpop.f32.mrf.mxu0 }
 0x5b4   :  { %v1399_v62 = vpop.f32.mrf.mxu1 }
 0x5b5   :  { %v903_v10 = vadd.f32 %v1419_v0, %v1399_v62  ;;  %v1125_v0 = vld [vmem:[%s1904_s6] sm:$0x1] }
 0x5b6   :  { %v785_v63 = vpop.f32.mrf.mxu1 }
 0x5b7   :  { %v895_v6 = vadd.f32 %v894_v2, %v785_v63 }
 0x5b8   :  { %v1400_v1 = vpop.f32.mrf.mxu1 }
 0x5b9   :  { %v906_v13 = vadd.f32 %v1420_v4, %v1400_v1 }
 0x5ba   :  { %v788_v3 = vpop.f32.mrf.mxu1 }
 0x5bb   :  { %v898_v11 = vadd.f32 %v897_v7, %v788_v3 }
 0x5d4   :  { %v1439_v5 = vpop.f32.mrf.mxu1 }
 0x5d5   :  { %v1838_v14 = vadd.f32 %v1439_v5, %v903_v10 }
 0x5d6   :  { %v1036_v9 = vpop.f32.mrf.mxu1 }
 0x5d7   :  { %v1836_v12 = vadd.f32 %v1036_v9, %v895_v6  ;;  %v1066_v35 = vmul.f32 %v1838_v14, %v1838_v14 }
 0x5d8   :  { %v1440_v8 = vpop.f32.mrf.mxu1 }
 0x5d9   :  { %v1064_v18 = vmul.f32 %v1836_v12, %v1836_v12  ;;  %v1844_v31 = vadd.f32 %v1440_v8, %v906_v13 }
 0x5da   :  { %v1039_v49 = vpop.f32.mrf.mxu1 }
 0x5db   :  { %v1840_v15 = vadd.f32 %v1039_v49, %v898_v11  ;;  %v1067_v21 = vmul.f32 %v1844_v31, %v1844_v31 }
 0x5dd   :  { %v1055_v36 = vadd.f32 %v1840_v15, %v1836_v12  ;;  %v1065_v19 = vmul.f32 %v1840_v15, %v1840_v15 }
 0x5df   :  { %v1056_v38 = vadd.f32 %v1055_v36, %v1838_v14  ;;  %v1068_v20 = vadd.f32 %v1065_v19, %v1064_v18 }
 0x5e1   :  { %v1057_v22 = vadd.f32 %v1056_v38, %v1844_v31  ;;  %v1069_v23 = vadd.f32 %v1068_v20, %v1066_v35 }
 0x5e3   :  { %v1058_v24 = vrot.slane %v1057_v22, 4  ;;  %v1070_v25 = vadd.f32 %v1069_v23, %v1067_v21 }
 0x5e5   :  { %v1059_v27 = vadd.f32 %v1058_v24, %v1057_v22  ;;  %v1071_v28 = vrot.slane %v1070_v25, 4 }
 0x5e7   :  { %v1060_v29 = vrot.slane %v1059_v27, 2  ;;  %v1072_v30 = vadd.f32 %v1071_v28, %v1070_v25 }
 0x5e9   :  { %v1061_v32 = vadd.f32 %v1060_v29, %v1059_v27  ;;  %v1073_v34 = vrot.slane %v1072_v30, 2 }
 0x5eb   :  { %v1062_v37 = vrot.slane %v1061_v32, 1  ;;  %v1074_v39 = vadd.f32 %v1073_v34, %v1072_v30 }
 0x5ed   :  { %v1075_v40 = vrot.slane %v1074_v39, 1  ;;  %v1063_v41 = vadd.f32 %v1062_v37, %v1061_v32 }
 0x5ef   :  { %v1076_v42 = vadd.f32 %v1075_v40, %v1074_v39 }
 0x5f1   :  { %v1077_v43 = vsel %vm419_vm7, %v1063_v41, %v1076_v42 }
 0x5f2   :  { %1079 = vrot.lane.b32.xlu0 %v1077_v43, %s1493_s0 }
 0x664   :  { %v1080_v44 = vpop.permute.xlu0 %1079 }
 0x665   :  { %v1082_v45 = vadd.f32 %v1080_v44, %v1077_v43 }
 0x667   :  { %1084 = vrot.lane.b32.xlu1 %v1082_v45, %s1494_s1 }
 0x6d9   :  { %v1085_v46 = vpop.permute.xlu1 %1084 }
 0x6da   :  { %v1087_v47 = vadd.f32 %v1085_v46, %v1082_v45 }
 0x6dc   :  { %1089 = vrot.lane.b32.xlu0 %v1087_v47, %s1495_s18 }
 0x74e   :  { %v1090_v33 = vpop.permute.xlu0 %1089 }
 0x74f   :  { %v1092_v48 = vadd.f32 %v1090_v33, %v1087_v47 }
 0x751   :  { %1094 = vrot.lane.b32.xlu1 %v1092_v48, %s1496_s19 }
 0x7c3   :  { %v1095_v58 = vpop.permute.xlu1 %1094 }
 0x7c4   :  { %v1097_v50 = vadd.f32 %v1095_v58, %v1092_v48 }
 0x7c6   :  { %v1098_v51 = vmul.f32 0.001953125, %v1097_v50 }
 0x7c8   :  { %v1099_v52 = vmul.f32 %v1098_v51, %v1098_v51 }
 0x7ca   :  { %v1101_v53 = vrot.slane %v1099_v52, 7 }
 0x7cc   :  { %v1103_v54 = vsub.f32 %v1098_v51, %v1101_v53 }
 0x7ce   :  { %v1105_v55 = vadd.f32 1e-05, %v1103_v54 }
 0x7d0   :  { %1491 = vrsqrt.f32 %v1105_v55 }
 0x7dd   :  { %v1492_v56 = vpop.eup %1491 }
 0x7de   :  { %v1114_v57 = vrot.slane %v1492_v56, %v1685_v17 }
 0x7e0   :  { %v1115_v60 = vcombine.high %v1114_v57, %v1114_v57 }
 0x7e2   :  { %v1122_v62 = vrot.slane %v1115_v60, %v1685_v17 }
 0x7e4   :  { %v1124_v63 = vmul.f32 %v1122_v62, %v1104_v61 }
 0x7e6   :  { %v1126_v1 = vmul.f32 %v1124_v63, %v1098_v51 }
 0x7e8   :  { %v1127_v2 = vsub.f32 %v1125_v0, %v1126_v1 }
 0x7ea   :  { %v1132_v3 = vrot.slane %v1127_v2, %v1696_v26 }
 0x7ec   :  { %v1134_v4 = vsel %vm419_vm7, %v1124_v63, %v1132_v3 }
 0x7ed   :  { %1136 = vrot.lane.b32.xlu0 %v1134_v4, %s1498_s24 }
 0x85f   :  { %v1137_v5 = vpop.permute.xlu0 %1136 }
 0x860   :  { %v1139_v9 = vsel %vm482_vm12, %v1134_v4, %v1137_v5 }
 0x861   :  { %1141 = vrot.lane.b32.xlu1 %v1139_v9, %s1499_s3 }
 0x8d3   :  { %v1142_v6 = vpop.permute.xlu1 %1141 }
 0x8d4   :  { %v1144_v17 = vsel %vm488_vm13, %v1139_v9, %v1142_v6 }
 0x8d5   :  { %1146 = vrot.lane.b32.xlu0 %v1144_v17, %s1500_s26 }
 0x947   :  { %v1147_v7 = vpop.permute.xlu0 %1146 }
 0x948   :  { %v1149_v8 = vsel %vm494_vm14, %v1144_v17, %v1147_v7 }
 0x949   :  { %1151 = vrot.lane.b32.xlu1 %v1149_v8, %s1493_s0 }
 0x9bb   :  { %v1152_v10 = vpop.permute.xlu1 %1151 }
 0x9bc   :  { %v1154_v11 = vsel %vm131_vm2, %v1149_v8, %v1152_v10 }
 0x9bd   :  { %v1158_v49 = vrot.slane %v1154_v11, %v1696_v26  ;;  %v1166_v13 = vrot.slane %v1154_v11, %v511_v59 }
 0x9bf   :  { %v1159_v18 = vmul.f32 %v1158_v49, %v1836_v12  ;;  %v1160_v36 = vmul.f32 %v1158_v49, %v1840_v15  ;;  %v1161_v19 = vmul.f32 %v1158_v49, %v1838_v14  ;;  %v1162_v35 = vmul.f32 %v1158_v49, %v1844_v31 }
 0x9c1   :  { %v1167_v38 = vadd.f32 %v1166_v13, %v1159_v18  ;;  %v1168_v20 = vadd.f32 %v1166_v13, %v1160_v36  ;;  %v1169_v21 = vadd.f32 %v1166_v13, %v1161_v19  ;;  %v1170_v22 = vadd.f32 %v1166_v13, %v1162_v35 }
 0x9c3   :  { %v1171_v23 = vmax.f32 %v1167_v38, 0.0  ;;  %v1172_v24 = vmax.f32 %v1168_v20, 0.0  ;;  %v1173_v25 = vmax.f32 %v1169_v21, 0.0  ;;  %v1174_v27 = vmax.f32 %v1170_v22, 0.0 }
 0x9c5   :  { %1175 = vst [vmem:[%s1905_s7] sm:$0xff] %v1171_v23  ;;  %1176 = vst [vmem:[%s1905_s7 + $0x8] sm:$0xff] %v1172_v24 }
 0x9c6   :  { %1177 = vst [vmem:[%s1905_s7 + $0x10] sm:$0xff] %v1173_v25  ;;  %1178 = vst [vmem:[%s1905_s7 + $0x18] sm:$0xff] %v1174_v27 }

</bundles_post_ra>
